<compile_context>
chip_gen: v5e
topology: v5e:2x2
jax: 0.10.0
libtpu: 0.0.40
codegen_flags: <defaults>
</compile_context>

<pallas_src>
import functools

import jax
import jax.numpy as jnp
from jax.experimental import pallas as pl
from jax.experimental.pallas import tpu as pltpu


def _round_up(x, m):
    return (x + m - 1) // m * m


# --------------------------------------------------------------------------
# softmax=False (default) path: dense flat 2-D layout, per-block partial sums
# --------------------------------------------------------------------------
def _ce_flat_kernel(p_ref, t_ref, out_ref):
    p = p_ref[...].astype(jnp.float32)                      # (BR, L)
    t = t_ref[...].astype(jnp.float32)
    per = -t * jnp.log(jnp.maximum(p, jnp.float32(1e-8)))
    # Lane-dense per-block partial sum; final reduce happens in the wrapper.
    out_ref[...] = jnp.sum(per, axis=0, keepdims=True)      # (1, L)


def _soft_ce_flat(pred_flat, tgt_flat, inv_count):
    """pred_flat / tgt_flat: 1-D arrays holding all B*C*S elements."""
    n = pred_flat.shape[0]
    lane = 512                                    # lane width (multiple of 128)
    rows = _round_up(n, lane) // lane
    block_rows = min(1024, _round_up(rows, 8))    # big, 8-aligned row tile
    rows_pad = _round_up(rows, block_rows)
    n_pad = rows_pad * lane

    # Padding contributes exactly 0: target 0, pred 1 -> -0 * log(1) = 0.
    if n_pad != n:
        pred_flat = jnp.concatenate(
            [pred_flat, jnp.ones((n_pad - n,), pred_flat.dtype)])
        tgt_flat = jnp.concatenate(
            [tgt_flat, jnp.zeros((n_pad - n,), tgt_flat.dtype)])

    p2 = pred_flat.reshape(rows_pad, lane)
    t2 = tgt_flat.reshape(rows_pad, lane)
    n_blocks = rows_pad // block_rows

    itemsize = jnp.dtype(pred_flat.dtype).itemsize
    cost = pl.CostEstimate(
        flops=3 * n_pad,
        transcendentals=n_pad,
        bytes_accessed=2 * n_pad * itemsize + n_blocks * lane * 4,
    )

    partials = pl.pallas_call(
        _ce_flat_kernel,
        out_shape=jax.ShapeDtypeStruct((1, n_blocks * lane), jnp.float32),
        grid_spec=pltpu.PrefetchScalarGridSpec(
            num_scalar_prefetch=0,
            grid=(n_blocks,),
            in_specs=[
                pl.BlockSpec((block_rows, lane), lambda i: (i, 0)),
                pl.BlockSpec((block_rows, lane), lambda i: (i, 0)),
            ],
            out_specs=pl.BlockSpec((1, lane), lambda i: (0, i)),
        ),
        compiler_params=pltpu.CompilerParams(
            dimension_semantics=("parallel",),
            vmem_limit_bytes=32 * 1024 * 1024,
        ),
        cost_estimate=cost,
    )(p2, t2)

    return jnp.sum(partials) * jnp.float32(inv_count)


# --------------------------------------------------------------------------
# softmax=True path: (B, C, S) layout, channel log-softmax, per-block partials
# --------------------------------------------------------------------------
def _ce_softmax_kernel(p_ref, t_ref, out_ref):
    p = p_ref[...].astype(jnp.float32)                      # (1, C, ts)
    t = t_ref[...].astype(jnp.float32)
    m = jnp.max(p, axis=1, keepdims=True)
    shifted = p - m
    lse = jnp.log(jnp.sum(jnp.exp(shifted), axis=1, keepdims=True))
    per = -t * (shifted - lse)
    out_ref[...] = jnp.sum(per, axis=1, keepdims=True)      # (1, 1, ts)


def _soft_ce_softmax(pred3, tgt3, inv_count):
    B, C, S = pred3.shape
    s128 = _round_up(S, 128)
    max_block_elems = 1 << 19                       # ~2 MiB f32 per input buffer
    ts_cap = max(128, (max_block_elems // C) // 128 * 128)
    ts = min(s128, ts_cap)
    s_pad = _round_up(S, ts)

    if s_pad != S:
        pad = s_pad - S
        # Padded spatial positions: target 0 -> zero contribution (log_softmax
        # of the padded pred column is finite).
        pred3 = jnp.pad(pred3, ((0, 0), (0, 0), (0, pad)))
        tgt3 = jnp.pad(tgt3, ((0, 0), (0, 0), (0, pad)))
    n_tiles = s_pad // ts

    itemsize = jnp.dtype(pred3.dtype).itemsize
    n_elems = B * C * s_pad
    cost = pl.CostEstimate(
        flops=6 * n_elems,
        transcendentals=2 * n_elems,
        bytes_accessed=2 * n_elems * itemsize + B * s_pad * 4,
    )

    partials = pl.pallas_call(
        _ce_softmax_kernel,
        out_shape=jax.ShapeDtypeStruct((B, 1, s_pad), jnp.float32),
        grid_spec=pltpu.PrefetchScalarGridSpec(
            num_scalar_prefetch=0,
            grid=(B, n_tiles),
            in_specs=[
                pl.BlockSpec((1, C, ts), lambda b, s: (b, 0, s)),
                pl.BlockSpec((1, C, ts), lambda b, s: (b, 0, s)),
            ],
            out_specs=pl.BlockSpec((1, 1, ts), lambda b, s: (b, 0, s)),
        ),
        compiler_params=pltpu.CompilerParams(
            dimension_semantics=("parallel", "parallel"),
            vmem_limit_bytes=32 * 1024 * 1024,
        ),
        cost_estimate=cost,
    )(pred3, tgt3)

    return jnp.sum(partials) * jnp.float32(inv_count)


# --------------------------------------------------------------------------
# Public wrapper (matches SoftCrossEntropy.forward for probabilistic targets)
# --------------------------------------------------------------------------
def soft_cross_entropy(pred, target, *, softmax=False):
    """pred, target: (B, C, *spatial) class-wise probabilities (same shape)."""
    assert pred.shape == target.shape, (
        "probabilistic target must have the same shape as pred")
    shape = pred.shape
    B, C = shape[0], shape[1]
    S = 1
    for d in shape[2:]:
        S *= d
    inv_count = 1.0 / float(B * S)   # mean over batch * spatial positions

    if softmax:
        return _soft_ce_softmax(
            pred.reshape(B, C, S), target.reshape(B, C, S), inv_count)
    # No channel coupling in the clamp/log path: flatten everything and use
    # dense 2-D tiles (contiguous DMA, fully packed vregs).
    return _soft_ce_flat(pred.reshape(-1), target.reshape(-1), inv_count)


# --------------------------------------------------------------------------
# Pure-JAX reference
# --------------------------------------------------------------------------
def _reference(pred, target, softmax=False):
    B, C = pred.shape[0], pred.shape[1]
    p = pred.reshape(B, C, -1).astype(jnp.float32)
    t = target.reshape(B, C, -1).astype(jnp.float32)
    if softmax:
        per = -t * jax.nn.log_softmax(p, axis=1)
    else:
        per = -t * jnp.log(jnp.maximum(p, 1e-8))
    return jnp.mean(jnp.sum(per, axis=1))


if __name__ == "__main__":
    key = jax.random.PRNGKey(0)
    kp, kt = jax.random.split(key)

    B, C, H, W = 2, 4, 16, 16  # NCHW

    # Deterministic probabilistic inputs: softmax over the channel axis.
    pred = jax.nn.softmax(jax.random.normal(kp, (B, C, H, W), jnp.float32), axis=1)
    target = jax.nn.softmax(jax.random.normal(kt, (B, C, H, W), jnp.float32), axis=1)

    # Default path (softmax=False)
    loss = soft_cross_entropy(pred, target, softmax=False)
    loss = jax.block_until_ready(loss)
    ref = _reference(pred, target, softmax=False)
    assert jnp.allclose(loss, ref, rtol=1e-5, atol=1e-5), (loss, ref)

    # softmax=True path
    loss_sm = soft_cross_entropy(pred, target, softmax=True)
    loss_sm = jax.block_until_ready(loss_sm)
    ref_sm = _reference(pred, target, softmax=True)
    assert jnp.allclose(loss_sm, ref_sm, rtol=1e-5, atol=1e-5), (loss_sm, ref_sm)

    print("KERNEL_OK")
</pallas_src>

<mosaic_0001>
module attributes {stable_mosaic.version = 11 : i64} {
  func.func @_ce_flat_kernel(%arg0: i32, %arg1: memref<8x512xf32, #tpu.memory_space<vmem>>, %arg2: memref<8x512xf32, #tpu.memory_space<vmem>>, %arg3: memref<1x512xf32, #tpu.memory_space<vmem>>) attributes {dimension_semantics = [#tpu.dimension_semantics<parallel>], iteration_bounds = array<i64: 1>, scalar_prefetch = 0 : i64, scratch_operands = 0 : i64, tpu.core_type = #tpu.core_type<tc>, window_params = [{transform_indices = @transform_0, window_bounds = array<i64: 8, 512>}, {transform_indices = @transform_1, window_bounds = array<i64: 8, 512>}, {transform_indices = @transform_2, window_bounds = array<i64: 1, 512>}]} {
    %c0 = arith.constant 0 : index
    %c0_0 = arith.constant 0 : index
    %0 = vector.load %arg1[%c0, %c0_0] : memref<8x512xf32, #tpu.memory_space<vmem>>, vector<8x512xf32>
    %c0_1 = arith.constant 0 : index
    %c0_2 = arith.constant 0 : index
    %1 = vector.load %arg2[%c0_1, %c0_2] : memref<8x512xf32, #tpu.memory_space<vmem>>, vector<8x512xf32>
    %cst = arith.constant 0.000000e+00 : f32
    %2 = vector.broadcast %cst : f32 to vector<8x512xf32>
    %3 = arith.subf %2, %1 : vector<8x512xf32>
    %cst_3 = arith.constant 9.99999993E-9 : f32
    %4 = vector.broadcast %cst_3 : f32 to vector<8x512xf32>
    %5 = arith.maximumf %0, %4 : vector<8x512xf32>
    %6 = math.log %5 : vector<8x512xf32>
    %7 = arith.mulf %3, %6 : vector<8x512xf32>
    %cst_4 = arith.constant dense<0.000000e+00> : vector<512xf32>
    %8 = vector.multi_reduction <add>, %7, %cst_4 [0] : vector<8x512xf32> to vector<512xf32>
    %9 = vector.shape_cast %8 : vector<512xf32> to vector<1x512xf32>
    %c0_5 = arith.constant 0 : index
    %c0_6 = arith.constant 0 : index
    %10 = vector.load %arg3[%c0_5, %c0_6] : memref<1x512xf32, #tpu.memory_space<vmem>>, vector<1x512xf32>
    tpu.vector_store %arg3[%c0_5, %c0_6], %9 {strides = array<i32>} : memref<1x512xf32, #tpu.memory_space<vmem>>, vector<1x512xf32>,
    return
  }
  func.func @transform_0(%arg0: i32) -> (i32, i32) {
    %c0_i32 = arith.constant 0 : i32
    %c0_i32_0 = arith.constant 0 : i32
    return %arg0, %c0_i32 : i32, i32
  }
  func.func @transform_1(%arg0: i32) -> (i32, i32) {
    %c0_i32 = arith.constant 0 : i32
    %c0_i32_0 = arith.constant 0 : i32
    return %arg0, %c0_i32 : i32, i32
  }
  func.func @transform_2(%arg0: i32) -> (i32, i32) {
    %c0_i32 = arith.constant 0 : i32
    %c0_i32_0 = arith.constant 0 : i32
    return %c0_i32, %arg0 : i32, i32
  }
}

</mosaic_0001>

<bundles_post_ra>
// kernel: tpu_custom_call.1
= control target key start
LH: loop header
LB: loop body
LE: loop exit
PB: predicated region body
PF: predicated region fallthrough
CT: control target
= control target key end

     0   :  { %7 = vsyncpa [#allocation3], 0  ;;  %s245_s0 = inlined_call_operand.hbm [shape: f32[8,512], index: 0, kind: input, shape index: {}]   ;;  %s246_s1 = inlined_call_operand.hbm [shape: f32[8,512], index: 1, kind: input, shape index: {}]   ;;  %s247_s2 = inlined_call_operand.hbm [shape: f32[1,512], index: 2, kind: output, shape index: {}]  }
   0x1   :  { %8 = vsyncpa [#allocation6], 0 }
   0x2   :  { %9 = vsyncpa [#allocation4], 0  ;;  %s15_s11 = sshll.u32 %s245_s0, 4  ;;  %s218_s12 = smov [#allocation2]   ;;  %s16_s11 = int_to_ptr.hbm [resolvable:$true] %s15_s11 }
   0x3   :  { %s17_s13 = sshll.u32 %s218_s12, 4  ;;  %s26_s16 = sshll.u32 %s246_s1, 4  ;;  %s18_s13 = int_to_ptr.vmem [resolvable:$true] %s17_s13  ;;  %s27_s16 = int_to_ptr.hbm [resolvable:$true] %s26_s16 }
   0x4   :  { %20 = dma.hbm_to_vmem [thread:$0]  %s16_s11, 512, %s18_s13, [#allocation3]  }
   0x5   :  { %s219_s17 = smov [#allocation5]  }
   0x6   :  { %s28_s18 = sshll.u32 %s219_s17, 4  ;;  %s29_s18 = int_to_ptr.vmem [resolvable:$true] %s28_s18 }
   0x7   :  { %31 = dma.hbm_to_vmem [thread:$0]  %s27_s16, 512, %s29_s18, [#allocation6]  }
   0x8   :  { %212 = dma.done.wait [#allocation3], 512  }
   0x9   :  { %213 = vsyncadd [#allocation3], 4294966784 }
   0xa   :  { %214 = dma.done.wait [#allocation6], 512  }
   0xb   :  { %215 = vsyncadd [#allocation6], 4294966784  ;;  %v40_v0 = vld [vmem:[#allocation2] sm:$0xff]  ;;  %v41_v1 = vld [vmem:[#allocation2 + $0x8] sm:$0xff]  ;;  %vm99_vm0 = vcmask 1040384   ;;  %v106_v51 = vlaneseq  ;;  %vm101_vm1 = vcmask 1042434  }
   0xc   :  { %v42_v2 = vld [vmem:[#allocation2 + $0x10] sm:$0xff]  ;;  %v43_v3 = vld [vmem:[#allocation2 + $0x18] sm:$0xff]  ;;  %v52_v4 = vmax.f32 %v40_v0, 1e-08  ;;  %v53_v5 = vmax.f32 %v41_v1, 1e-08 }
   0xd   :  { %v54_v6 = vmax.f32 %v42_v2, 1e-08  ;;  %v55_v7 = vmax.f32 %v43_v3, 1e-08  ;;  %v44_v8 = vld [vmem:[#allocation5] sm:$0xff]  ;;  %v45_v9 = vld [vmem:[#allocation5 + $0x8] sm:$0xff] }
   0xe   :  { %132 = vlog2.f32 %v52_v4  ;;  %v46_v10 = vld [vmem:[#allocation5 + $0x10] sm:$0xff]  ;;  %v47_v11 = vld [vmem:[#allocation5 + $0x18] sm:$0xff]  ;;  %v48_v12 = vsub.f32 0.0, %v44_v8  ;;  %v49_v14 = vsub.f32 0.0, %v45_v9  ;;  %s220_s0 = smov [#allocation7]   ;;  %s118_s21 = sshll.u32 %s247_s2, 4  ;;  %s119_s21 = int_to_ptr.hbm [resolvable:$true] %s118_s21 }
   0xf   :  { %134 = vlog2.f32 %v53_v5  ;;  %v50_v16 = vsub.f32 0.0, %v46_v10  ;;  %v51_v19 = vsub.f32 0.0, %v47_v11  ;;  %s116_s1 = sshll.u32 %s220_s0, 4  ;;  %vm103_vm2 = vcmask 1041408   ;;  %s117_s1 = int_to_ptr.vmem [resolvable:$true] %s116_s1 }
  0x10   :  { %136 = vlog2.f32 %v54_v6  ;;  %vm108_vm3 = vcmp.lt.s32.totalorder %v106_v51, 512 }
  0x11   :  { %138 = vlog2.f32 %v55_v7 }
  0x14   :  { %v133_v13 = vpop.eup %132 }
  0x15   :  { %v135_v15 = vpop.eup %134  ;;  %v57_v17 = vmul.f32 0.6931472, %v133_v13 }
  0x16   :  { %v137_v18 = vpop.eup %136  ;;  %v59_v20 = vmul.f32 0.6931472, %v135_v15 }
  0x17   :  { %v139_v21 = vpop.eup %138  ;;  %v61_v22 = vmul.f32 0.6931472, %v137_v18  ;;  %v64_v23 = vmul.f32 %v57_v17, %v48_v12 }
  0x18   :  { %v63_v24 = vmul.f32 0.6931472, %v139_v21  ;;  %v65_v25 = vmul.f32 %v59_v20, %v49_v14 }
  0x19   :  { %v66_v26 = vmul.f32 %v61_v22, %v50_v16  ;;  %v68_v27 = vrot.slane %v64_v23, 4 }
  0x1a   :  { %v67_v28 = vmul.f32 %v63_v24, %v51_v19  ;;  %v74_v29 = vrot.slane %v65_v25, 4 }
  0x1b   :  { %v69_v30 = vadd.f32 %v68_v27, %v64_v23  ;;  %v80_v31 = vrot.slane %v66_v26, 4 }
  0x1c   :  { %v75_v32 = vadd.f32 %v74_v29, %v65_v25  ;;  %v86_v33 = vrot.slane %v67_v28, 4 }
  0x1d   :  { %v70_v34 = vrot.slane %v69_v30, 2  ;;  %v81_v35 = vadd.f32 %v80_v31, %v66_v26 }
  0x1e   :  { %v76_v36 = vrot.slane %v75_v32, 2  ;;  %v87_v37 = vadd.f32 %v86_v33, %v67_v28 }
  0x1f   :  { %v71_v38 = vadd.f32 %v70_v34, %v69_v30  ;;  %v82_v39 = vrot.slane %v81_v35, 2 }
  0x20   :  { %v77_v40 = vadd.f32 %v76_v36, %v75_v32  ;;  %v88_v41 = vrot.slane %v87_v37, 2 }
  0x21   :  { %v72_v42 = vrot.slane %v71_v38, 1  ;;  %v83_v43 = vadd.f32 %v82_v39, %v81_v35 }
  0x22   :  { %v78_v44 = vrot.slane %v77_v40, 1  ;;  %v89_v45 = vadd.f32 %v88_v41, %v87_v37 }
  0x23   :  { %v84_v46 = vrot.slane %v83_v43, 1  ;;  %v73_v47 = vadd.f32 %v72_v42, %v71_v38 }
  0x24   :  { %v79_v48 = vadd.f32 %v78_v44, %v77_v40  ;;  %v90_v49 = vrot.slane %v89_v45, 1 }
  0x25   :  { %v85_v50 = vadd.f32 %v84_v46, %v83_v43 }
  0x26   :  { %v91_v52 = vadd.f32 %v90_v49, %v89_v45  ;;  %v96_v53 = vrot.slane %v79_v48, 7 }
  0x27   :  { %v97_v54 = vrot.slane %v85_v50, 6 }
  0x28   :  { %v98_v55 = vrot.slane %v91_v52, 5  ;;  %v100_v56 = vsel %vm99_vm0, %v73_v47, %v96_v53 }
  0x2a   :  { %v102_v57 = vsel %vm101_vm1, %v97_v54, %v98_v55 }
  0x2b   :  { %v104_v58 = vsel %vm103_vm2, %v100_v56, %v102_v57 }
  0x2c   :  { %110 = vst.msk [vmem:[#allocation7] sm:$0xf] %vm108_vm3, %v104_v58 }
  0x2d   :  { %121 = dma.vmem_to_hbm [thread:$0]  %s117_s1, 64, %s119_s21, [#allocation4]  }
  0x2e   :  { %216 = dma.done.wait [#allocation4], 64  }
  0x2f   :  { %217 = vsyncadd [#allocation4], 4294967232 }
  0x30   :  { %126 = vsyncpa [#allocation3], 1 }
  0x31   :  { %127 = vsyncpa [#allocation6], 1 }
  0x32   :  { %128 = vsyncpa [#allocation4], 1 }

</bundles_post_ra>
